<compile_context>
chip_gen: v7x
topology: tpu7x:2x2x1
jax: 0.10.0
libtpu: 0.0.40
codegen_flags: <defaults>
</compile_context>

<pallas_src>
import math

import jax
import jax.numpy as jnp
from jax.experimental import pallas as pl
from jax.experimental.pallas import tpu as pltpu


def _round_up(x, m):
    return ((x + m - 1) // m) * m


def _cdiv(a, b):
    return -(-a // b)


def _min_sublane(dtype):
    """Minimum sublane tile for a dtype: 8 for f32, 16 for bf16, 32 for int8."""
    return max(8, 32 // jnp.dtype(dtype).itemsize)


# --------------------------------------------------------------------------
# Kernels
# --------------------------------------------------------------------------
def _diffs_3d_kernel(test_ref, train_ref, out_ref):
    # Used only when D % 128 == 0 (lanes already dense).
    # test_ref : (tn, D), train_ref : (tm, D), out_ref : (tn, tm, D)
    t = test_ref[...].astype(out_ref.dtype)
    r = train_ref[...].astype(out_ref.dtype)
    out_ref[...] = t[:, None, :] - r[None, :, :]


def _make_flat_diffs_kernel(d, reps):
    """Lane-flattened kernel: out[i, j*D + k] = test[i, k] - train[j, k].

    test_ref  : (tn, d)        resident across the train axis
    train_ref : (1, reps*d)    flattened train tile (streams, innermost axis)
    out_ref   : (tn, reps*d)   dense (multiple-of-128-lane) output block
    ttile_ref : (tn, reps*d)   VMEM scratch holding the test tile repeated
                               `reps` times along lanes; rebuilt only when the
                               train index j wraps to 0 (new test block).
    """

    def kernel(test_ref, train_ref, out_ref, ttile_ref):
        @pl.when(pl.program_id(1) == 0)
        def _build_tiled_test():
            t = test_ref[...].astype(out_ref.dtype)            # (tn, d)
            if d == 1:
                ttile_ref[...] = jnp.broadcast_to(t, ttile_ref.shape)
            else:
                # Static lane-window stores into VMEM scratch; amortized over
                # all train blocks of this test block.
                for r in range(reps):
                    ttile_ref[:, r * d:(r + 1) * d] = t

        out_ref[...] = ttile_ref[...] - train_ref[...].astype(out_ref.dtype)

    return kernel


# --------------------------------------------------------------------------
# Tile selection
# --------------------------------------------------------------------------
def _choose_flat_tiles(n, m, d, itemsize, sub_min, target_bytes):
    """(tn test rows, tm train rows) for the lane-flattened (N, M*D) layout."""
    tm_unit = 128 // math.gcd(d, 128)          # smallest tm with (tm*d) % 128 == 0
    m_units = _cdiv(m, tm_unit)
    if d == 1:
        max_units = max(1, 4096 // tm_unit)    # built via broadcast, no unroll cap
    else:
        max_units = max(1, min(4096 // (tm_unit * d), 256 // tm_unit))
    units = max(1, min(m_units, max_units))
    tm = units * tm_unit
    lane = tm * d

    n_sub = _round_up(n, sub_min)
    tn = (target_bytes // (lane * itemsize)) // sub_min * sub_min
    tn = max(sub_min, min(tn, n_sub))
    # Guarantee >=2 blocks along the parallel (test) axis when possible so both
    # v7x TensorCores get work.
    if tn >= n_sub and n_sub > sub_min:
        tn = min(n_sub, _round_up(_cdiv(n, 2), sub_min))
    return tn, tm


def _choose_3d_tiles(n, m, d, itemsize, sub_min, target_bytes):
    """(tn, tm) for the already-dense 3-D layout (D % 128 == 0)."""
    row = d * itemsize
    n_sub = _round_up(n, sub_min)
    m_sub = _round_up(m, sub_min)
    tn = min(n_sub, 128)
    tm = min(m_sub, 128)
    while tn * tm * row > target_bytes and tm > sub_min:
        tm = max(sub_min, (tm // 2) // sub_min * sub_min)
    while tn * tm * row > target_bytes and tn > sub_min:
        tn = max(sub_min, (tn // 2) // sub_min * sub_min)
    while tn < n_sub and 2 * tn * tm * row <= target_bytes:
        tn = min(n_sub, tn * 2)
    # Single-block grid -> split one axis for megacore.
    if tn >= n_sub and tm >= m_sub:
        if n_sub > sub_min:
            tn = min(n_sub, _round_up(_cdiv(n, 2), sub_min))
        elif m_sub > sub_min:
            tm = min(m_sub, _round_up(_cdiv(m, 2), sub_min))
    return tn, tm


# --------------------------------------------------------------------------
# Module
# --------------------------------------------------------------------------
class Kernel:
    """JAX/Pallas port of domainbed.lib.misc.Kernel (base class)."""

    def __init__(self, bw=None):
        self.bw = 0.05 if bw is None else bw

    def _diffs(self, test_Xs, train_Xs, *, tile_n=None, tile_m=None,
               out_dtype=None, block_target_bytes=8 * 1024 * 1024):
        """Computes difference between each x in test_Xs with all train_Xs.

        test_Xs: (N, *feat), train_Xs: (M, *feat)  ->  (N, M, *feat)

        out_dtype: pass a narrower dtype (e.g. bf16) to halve HBM writes when
        the downstream consumer tolerates it (defaults to the promoted dtype).
        """
        test_Xs = jnp.asarray(test_Xs)
        train_Xs = jnp.asarray(train_Xs)
        assert test_Xs.shape[1:] == train_Xs.shape[1:], "feature dims must match"

        n = int(test_Xs.shape[0])
        m = int(train_Xs.shape[0])
        assert n > 0 and m > 0, "empty inputs"
        feat_shape = tuple(test_Xs.shape[1:])
        d = 1
        for s in feat_shape:
            d *= int(s)
        assert d > 0, "empty feature dims"

        if out_dtype is None:
            out_dtype = jnp.promote_types(test_Xs.dtype, train_Xs.dtype)
        out_dtype = jnp.dtype(out_dtype)
        itemsize = out_dtype.itemsize
        sub_min = max(_min_sublane(test_Xs.dtype), _min_sublane(train_Xs.dtype),
                      _min_sublane(out_dtype))

        # Flatten trailing feature dims (contiguous reshape, free in XLA).
        t2 = test_Xs.reshape(n, d)
        r2 = train_Xs.reshape(m, d)

        cost = pl.CostEstimate(
            flops=n * m * d,
            transcendentals=0,
            bytes_accessed=(n * m * d * itemsize
                            + n * d * t2.dtype.itemsize
                            + m * d * r2.dtype.itemsize),
        )

        if d % 128 == 0:
            # ---------------- 3-D path: lanes (== D) are already dense ------
            a_tn, a_tm = _choose_3d_tiles(n, m, d, itemsize, sub_min,
                                          block_target_bytes)
            tn = a_tn if tile_n is None else int(tile_n)
            tm = a_tm if tile_m is None else int(tile_m)
            if tn % sub_min or tm % sub_min:
                raise ValueError(f"tiles must be multiples of {sub_min}")

            block_bytes = tn * tm * d * itemsize
            vmem_limit = min(128 * 1024 * 1024,
                             max(32 * 1024 * 1024, 4 * block_bytes))
            grid = (pl.cdiv(n, tn), pl.cdiv(m, tm))

            out = pl.pallas_call(
                _diffs_3d_kernel,
                out_shape=jax.ShapeDtypeStruct((n, m, d), out_dtype),
                grid_spec=pltpu.PrefetchScalarGridSpec(
                    num_scalar_prefetch=0,
                    grid=grid,
                    in_specs=[
                        pl.BlockSpec((tn, d), lambda i, j: (i, 0)),
                        pl.BlockSpec((tm, d), lambda i, j: (j, 0)),
                    ],
                    out_specs=pl.BlockSpec((tn, tm, d), lambda i, j: (i, j, 0)),
                ),
                compiler_params=pltpu.CompilerParams(
                    dimension_semantics=("parallel", "parallel"),
                    vmem_limit_bytes=vmem_limit,
                ),
                cost_estimate=cost,
            )(t2, r2)
            return out.reshape((n, m) + feat_shape)

        # ---------------- lane-flattened path: output (N, M*D) -------------
        a_tn, a_tm = _choose_flat_tiles(n, m, d, itemsize, sub_min,
                                        block_target_bytes)
        tn = a_tn if tile_n is None else int(tile_n)
        tm = a_tm if tile_m is None else int(tile_m)
        if tn % sub_min:
            raise ValueError(f"tile_n must be a multiple of {sub_min}")
        if tm >= m:
            tm = m                      # full-lane-dim block (always legal)
        elif (tm * d) % 128:
            raise ValueError("tile_m * D must be a multiple of 128 (or >= M)")

        lane = tm * d
        block_bytes = tn * lane * itemsize
        vmem_limit = min(128 * 1024 * 1024,
                         max(32 * 1024 * 1024, 4 * block_bytes))
        grid = (pl.cdiv(n, tn), pl.cdiv(m, tm))

        r_flat = r2.reshape(1, m * d)   # contiguous, free
        kernel = _make_flat_diffs_kernel(d, tm)

        out = pl.pallas_call(
            kernel,
            out_shape=jax.ShapeDtypeStruct((n, m * d), out_dtype),
            grid_spec=pltpu.PrefetchScalarGridSpec(
                num_scalar_prefetch=0,
                grid=grid,
                in_specs=[
                    # test tile: depends only on i -> stays resident over j
                    pl.BlockSpec((tn, d), lambda i, j: (i, 0)),
                    # flattened train tile: streams along the innermost axis
                    pl.BlockSpec((1, lane), lambda i, j: (0, j)),
                ],
                out_specs=pl.BlockSpec((tn, lane), lambda i, j: (i, j)),
                scratch_shapes=[pltpu.VMEM((tn, lane), out_dtype)],
            ),
            compiler_params=pltpu.CompilerParams(
                # j is "arbitrary": the scratch tiled-test is cached across it.
                dimension_semantics=("parallel", "arbitrary"),
                vmem_limit_bytes=vmem_limit,
            ),
            cost_estimate=cost,
        )(t2, r_flat)

        # (N, M*D) -> (N, M, *feat): contiguous reshape, no copy.
        return out.reshape((n, m) + feat_shape)

    def forward(self, test_Xs, train_Xs):
        """Computes p(x) for each x in test_Xs given train_Xs."""
        # TODO(synk): abstract in the PyTorch base class (no body); subclasses
        #             should fuse the D-reduction on the MXU instead of calling
        #             _diffs and reducing the materialized (N, M, D) tensor.
        return None

    def sample(self, train_Xs):
        """Generates samples from the kernel distribution."""
        # TODO(synk): abstract in the PyTorch base class (no body).
        return None


if __name__ == "__main__":
    key = jax.random.PRNGKey(0)
    k1, k2, k3, k4 = jax.random.split(key, 4)

    kern = Kernel()  # bw defaults to 0.05, matching the PyTorch __init__
    assert kern.bw == 0.05

    # Case 1: D=32 (< 128) -> lane-flattened path, auto tiles (2 test blocks).
    N, M, D = 40, 24, 32
    test_Xs = jax.random.normal(k1, (N, D), dtype=jnp.float32)
    train_Xs = jax.random.normal(k2, (M, D), dtype=jnp.float32)
    ref = test_Xs[:, None, :] - train_Xs[None, :, :]
    diffs = jax.block_until_ready(kern._diffs(test_Xs, train_Xs))
    assert diffs.shape == (N, M, D)
    assert jnp.allclose(diffs, ref, atol=1e-6), "auto-tiled mismatch vs reference"

    # Case 2: explicit small tiles -> 3x3 grid with ragged (masked) edge blocks.
    diffs_tiled = jax.block_until_ready(
        kern._diffs(test_Xs, train_Xs, tile_n=16, tile_m=8))
    assert diffs_tiled.shape == (N, M, D)
    assert jnp.allclose(diffs_tiled, ref, atol=1e-6), "tiled mismatch vs reference"

    # Case 3: mixed dtypes (bf16 train) promotes to f32 inside the kernel.
    train_bf16 = train_Xs.astype(jnp.bfloat16)
    diffs_mixed = jax.block_until_ready(kern._diffs(test_Xs, train_bf16))
    ref_mixed = test_Xs[:, None, :] - train_bf16.astype(jnp.float32)[None, :, :]
    assert diffs_mixed.dtype == jnp.float32
    assert jnp.allclose(diffs_mixed, ref_mixed, atol=1e-6), "mixed-dtype mismatch"

    # Case 4: D=128 (multiple of 128), multi-dim features -> dense 3-D path.
    N2, M2 = 12, 16
    test2 = jax.random.normal(k3, (N2, 8, 16), dtype=jnp.float32)
    train2 = jax.random.normal(k4, (M2, 8, 16), dtype=jnp.float32)
    ref2 = test2[:, None] - train2[None, :]
    diffs2 = jax.block_until_ready(kern._diffs(test2, train2))
    assert diffs2.shape == (N2, M2, 8, 16)
    assert jnp.allclose(diffs2, ref2, atol=1e-6), "3-D path mismatch vs reference"

    print("KERNEL_OK")
</pallas_src>

<mosaic_0001>
module attributes {stable_mosaic.version = 11 : i64} {
  func.func @kernel(%arg0: i32, %arg1: i32, %arg2: memref<24x32xf32, #tpu.memory_space<vmem>>, %arg3: memref<1x768xf32, #tpu.memory_space<vmem>>, %arg4: memref<24x768xf32, #tpu.memory_space<vmem>>, %arg5: memref<24x768xf32, #tpu.memory_space<vmem>>) attributes {dimension_semantics = [#tpu.dimension_semantics<parallel>, #tpu.dimension_semantics<arbitrary>], iteration_bounds = array<i64: 2, 1>, scalar_prefetch = 0 : i64, scratch_operands = 1 : i64, tpu.core_type = #tpu.core_type<tc>, window_params = [{transform_indices = @transform_0, window_bounds = array<i64: 24, 32>}, {transform_indices = @transform_1, window_bounds = array<i64: 1, 768>}, {transform_indices = @transform_2, window_bounds = array<i64: 24, 768>}]} {
    %c0_i32 = arith.constant 0 : i32
    %0 = arith.cmpi eq, %arg1, %c0_i32 : i32
    %1 = arith.extui %0 : i1 to i32
    %c0_i32_0 = arith.constant 0 : i32
    %2 = arith.cmpi ne, %1, %c0_i32_0 : i32
    scf.if %2 {
      %c0_6 = arith.constant 0 : index
      %c0_7 = arith.constant 0 : index
      %8 = vector.load %arg2[%c0_6, %c0_7] : memref<24x32xf32, #tpu.memory_space<vmem>>, vector<24x32xf32>
      %c0_8 = arith.constant 0 : index
      %c0_9 = arith.constant 0 : index
      %9 = vector.load %arg5[%c0_8, %c0_9] : memref<24x768xf32, #tpu.memory_space<vmem>>, vector<24x32xf32>
      tpu.vector_store %arg5[%c0_8, %c0_9], %8 {strides = array<i32>} : memref<24x768xf32, #tpu.memory_space<vmem>>, vector<24x32xf32>,
      %c0_10 = arith.constant 0 : index
      %c32 = arith.constant 32 : index
      %10 = vector.load %arg5[%c0_10, %c32] : memref<24x768xf32, #tpu.memory_space<vmem>>, vector<24x32xf32>
      tpu.vector_store %arg5[%c0_10, %c32], %8 {strides = array<i32>} : memref<24x768xf32, #tpu.memory_space<vmem>>, vector<24x32xf32>,
      %c0_11 = arith.constant 0 : index
      %c64 = arith.constant 64 : index
      %11 = vector.load %arg5[%c0_11, %c64] : memref<24x768xf32, #tpu.memory_space<vmem>>, vector<24x32xf32>
      tpu.vector_store %arg5[%c0_11, %c64], %8 {strides = array<i32>} : memref<24x768xf32, #tpu.memory_space<vmem>>, vector<24x32xf32>,
      %c0_12 = arith.constant 0 : index
      %c96 = arith.constant 96 : index
      %12 = vector.load %arg5[%c0_12, %c96] : memref<24x768xf32, #tpu.memory_space<vmem>>, vector<24x32xf32>
      tpu.vector_store %arg5[%c0_12, %c96], %8 {strides = array<i32>} : memref<24x768xf32, #tpu.memory_space<vmem>>, vector<24x32xf32>,
      %c0_13 = arith.constant 0 : index
      %c128 = arith.constant 128 : index
      %13 = vector.load %arg5[%c0_13, %c128] : memref<24x768xf32, #tpu.memory_space<vmem>>, vector<24x32xf32>
      tpu.vector_store %arg5[%c0_13, %c128], %8 {strides = array<i32>} : memref<24x768xf32, #tpu.memory_space<vmem>>, vector<24x32xf32>,
      %c0_14 = arith.constant 0 : index
      %c160 = arith.constant 160 : index
      %14 = vector.load %arg5[%c0_14, %c160] : memref<24x768xf32, #tpu.memory_space<vmem>>, vector<24x32xf32>
      tpu.vector_store %arg5[%c0_14, %c160], %8 {strides = array<i32>} : memref<24x768xf32, #tpu.memory_space<vmem>>, vector<24x32xf32>,
      %c0_15 = arith.constant 0 : index
      %c192 = arith.constant 192 : index
      %15 = vector.load %arg5[%c0_15, %c192] : memref<24x768xf32, #tpu.memory_space<vmem>>, vector<24x32xf32>
      tpu.vector_store %arg5[%c0_15, %c192], %8 {strides = array<i32>} : memref<24x768xf32, #tpu.memory_space<vmem>>, vector<24x32xf32>,
      %c0_16 = arith.constant 0 : index
      %c224 = arith.constant 224 : index
      %16 = vector.load %arg5[%c0_16, %c224] : memref<24x768xf32, #tpu.memory_space<vmem>>, vector<24x32xf32>
      tpu.vector_store %arg5[%c0_16, %c224], %8 {strides = array<i32>} : memref<24x768xf32, #tpu.memory_space<vmem>>, vector<24x32xf32>,
      %c0_17 = arith.constant 0 : index
      %c256 = arith.constant 256 : index
      %17 = vector.load %arg5[%c0_17, %c256] : memref<24x768xf32, #tpu.memory_space<vmem>>, vector<24x32xf32>
      tpu.vector_store %arg5[%c0_17, %c256], %8 {strides = array<i32>} : memref<24x768xf32, #tpu.memory_space<vmem>>, vector<24x32xf32>,
      %c0_18 = arith.constant 0 : index
      %c288 = arith.constant 288 : index
      %18 = vector.load %arg5[%c0_18, %c288] : memref<24x768xf32, #tpu.memory_space<vmem>>, vector<24x32xf32>
      tpu.vector_store %arg5[%c0_18, %c288], %8 {strides = array<i32>} : memref<24x768xf32, #tpu.memory_space<vmem>>, vector<24x32xf32>,
      %c0_19 = arith.constant 0 : index
      %c320 = arith.constant 320 : index
      %19 = vector.load %arg5[%c0_19, %c320] : memref<24x768xf32, #tpu.memory_space<vmem>>, vector<24x32xf32>
      tpu.vector_store %arg5[%c0_19, %c320], %8 {strides = array<i32>} : memref<24x768xf32, #tpu.memory_space<vmem>>, vector<24x32xf32>,
      %c0_20 = arith.constant 0 : index
      %c352 = arith.constant 352 : index
      %20 = vector.load %arg5[%c0_20, %c352] : memref<24x768xf32, #tpu.memory_space<vmem>>, vector<24x32xf32>
      tpu.vector_store %arg5[%c0_20, %c352], %8 {strides = array<i32>} : memref<24x768xf32, #tpu.memory_space<vmem>>, vector<24x32xf32>,
      %c0_21 = arith.constant 0 : index
      %c384 = arith.constant 384 : index
      %21 = vector.load %arg5[%c0_21, %c384] : memref<24x768xf32, #tpu.memory_space<vmem>>, vector<24x32xf32>
      tpu.vector_store %arg5[%c0_21, %c384], %8 {strides = array<i32>} : memref<24x768xf32, #tpu.memory_space<vmem>>, vector<24x32xf32>,
      %c0_22 = arith.constant 0 : index
      %c416 = arith.constant 416 : index
      %22 = vector.load %arg5[%c0_22, %c416] : memref<24x768xf32, #tpu.memory_space<vmem>>, vector<24x32xf32>
      tpu.vector_store %arg5[%c0_22, %c416], %8 {strides = array<i32>} : memref<24x768xf32, #tpu.memory_space<vmem>>, vector<24x32xf32>,
      %c0_23 = arith.constant 0 : index
      %c448 = arith.constant 448 : index
      %23 = vector.load %arg5[%c0_23, %c448] : memref<24x768xf32, #tpu.memory_space<vmem>>, vector<24x32xf32>
      tpu.vector_store %arg5[%c0_23, %c448], %8 {strides = array<i32>} : memref<24x768xf32, #tpu.memory_space<vmem>>, vector<24x32xf32>,
      %c0_24 = arith.constant 0 : index
      %c480 = arith.constant 480 : index
      %24 = vector.load %arg5[%c0_24, %c480] : memref<24x768xf32, #tpu.memory_space<vmem>>, vector<24x32xf32>
      tpu.vector_store %arg5[%c0_24, %c480], %8 {strides = array<i32>} : memref<24x768xf32, #tpu.memory_space<vmem>>, vector<24x32xf32>,
      %c0_25 = arith.constant 0 : index
      %c512 = arith.constant 512 : index
      %25 = vector.load %arg5[%c0_25, %c512] : memref<24x768xf32, #tpu.memory_space<vmem>>, vector<24x32xf32>
      tpu.vector_store %arg5[%c0_25, %c512], %8 {strides = array<i32>} : memref<24x768xf32, #tpu.memory_space<vmem>>, vector<24x32xf32>,
      %c0_26 = arith.constant 0 : index
      %c544 = arith.constant 544 : index
      %26 = vector.load %arg5[%c0_26, %c544] : memref<24x768xf32, #tpu.memory_space<vmem>>, vector<24x32xf32>
      tpu.vector_store %arg5[%c0_26, %c544], %8 {strides = array<i32>} : memref<24x768xf32, #tpu.memory_space<vmem>>, vector<24x32xf32>,
      %c0_27 = arith.constant 0 : index
      %c576 = arith.constant 576 : index
      %27 = vector.load %arg5[%c0_27, %c576] : memref<24x768xf32, #tpu.memory_space<vmem>>, vector<24x32xf32>
      tpu.vector_store %arg5[%c0_27, %c576], %8 {strides = array<i32>} : memref<24x768xf32, #tpu.memory_space<vmem>>, vector<24x32xf32>,
      %c0_28 = arith.constant 0 : index
      %c608 = arith.constant 608 : index
      %28 = vector.load %arg5[%c0_28, %c608] : memref<24x768xf32, #tpu.memory_space<vmem>>, vector<24x32xf32>
      tpu.vector_store %arg5[%c0_28, %c608], %8 {strides = array<i32>} : memref<24x768xf32, #tpu.memory_space<vmem>>, vector<24x32xf32>,
      %c0_29 = arith.constant 0 : index
      %c640 = arith.constant 640 : index
      %29 = vector.load %arg5[%c0_29, %c640] : memref<24x768xf32, #tpu.memory_space<vmem>>, vector<24x32xf32>
      tpu.vector_store %arg5[%c0_29, %c640], %8 {strides = array<i32>} : memref<24x768xf32, #tpu.memory_space<vmem>>, vector<24x32xf32>,
      %c0_30 = arith.constant 0 : index
      %c672 = arith.constant 672 : index
      %30 = vector.load %arg5[%c0_30, %c672] : memref<24x768xf32, #tpu.memory_space<vmem>>, vector<24x32xf32>
      tpu.vector_store %arg5[%c0_30, %c672], %8 {strides = array<i32>} : memref<24x768xf32, #tpu.memory_space<vmem>>, vector<24x32xf32>,
      %c0_31 = arith.constant 0 : index
      %c704 = arith.constant 704 : index
      %31 = vector.load %arg5[%c0_31, %c704] : memref<24x768xf32, #tpu.memory_space<vmem>>, vector<24x32xf32>
      tpu.vector_store %arg5[%c0_31, %c704], %8 {strides = array<i32>} : memref<24x768xf32, #tpu.memory_space<vmem>>, vector<24x32xf32>,
      %c0_32 = arith.constant 0 : index
      %c736 = arith.constant 736 : index
      %32 = vector.load %arg5[%c0_32, %c736] : memref<24x768xf32, #tpu.memory_space<vmem>>, vector<24x32xf32>
      tpu.vector_store %arg5[%c0_32, %c736], %8 {strides = array<i32>} : memref<24x768xf32, #tpu.memory_space<vmem>>, vector<24x32xf32>,
    } else {
    }
    %c0 = arith.constant 0 : index
    %c0_1 = arith.constant 0 : index
    %3 = vector.load %arg5[%c0, %c0_1] : memref<24x768xf32, #tpu.memory_space<vmem>>, vector<24x768xf32>
    %c0_2 = arith.constant 0 : index
    %c0_3 = arith.constant 0 : index
    %4 = vector.load %arg3[%c0_2, %c0_3] : memref<1x768xf32, #tpu.memory_space<vmem>>, vector<1x768xf32>
    %5 = vector.broadcast %4 : vector<1x768xf32> to vector<24x768xf32>
    %6 = arith.subf %3, %5 : vector<24x768xf32>
    %c0_4 = arith.constant 0 : index
    %c0_5 = arith.constant 0 : index
    %7 = vector.load %arg4[%c0_4, %c0_5] : memref<24x768xf32, #tpu.memory_space<vmem>>, vector<24x768xf32>
    tpu.vector_store %arg4[%c0_4, %c0_5], %6 {strides = array<i32>} : memref<24x768xf32, #tpu.memory_space<vmem>>, vector<24x768xf32>,
    return
  }
  func.func @transform_0(%arg0: i32, %arg1: i32) -> (i32, i32) {
    %c0_i32 = arith.constant 0 : i32
    %c0_i32_0 = arith.constant 0 : i32
    return %arg0, %c0_i32 : i32, i32
  }
  func.func @transform_1(%arg0: i32, %arg1: i32) -> (i32, i32) {
    %c0_i32 = arith.constant 0 : i32
    %c0_i32_0 = arith.constant 0 : i32
    return %c0_i32, %arg1 : i32, i32
  }
  func.func @transform_2(%arg0: i32, %arg1: i32) -> (i32, i32) {
    %c0_i32 = arith.constant 0 : i32
    return %arg0, %arg1 : i32, i32
  }
}

</mosaic_0001>

<bundles_post_ra>
// kernel: tpu_custom_call.1
= control target key start
LH: loop header
LB: loop body
LE: loop exit
PB: predicated region body
PF: predicated region fallthrough
CT: control target
= control target key end

     0   :  { %7 = vsyncpa [#allocation4], 0  ;;  %s918_s0 = inlined_call_operand.vmem [shape: f32[40,32], index: 0, kind: input, shape index: {}]   ;;  %s919_s1 = inlined_call_operand.vmem [shape: f32[1,768], index: 1, kind: input, shape index: {}]   ;;  %s920_s2 = inlined_call_operand.hbm [shape: f32[40,768], index: 2, kind: output, shape index: {}]  }
   0x1   :  { %9 = vsyncpa [#allocation4 + $0x1], 0  ;;  %s689_s9 = smov 0   ;;  %s691_s10 = smov 0  }
   0x2   :  { %s693_s11 = smov 0   ;;  %s695_s12 = smov 0  }
   0x3   :  { %s697_s13 = smov 0   ;;  %s699_s14 = smov 0  }
   0x4 LB: > { %s512_s15 = sadd.s32 4294967295, %s666_s14   ;;  %s513_s16 = sadd.s32 4294967294, %s666_s14   ;;  %s666_s14 = sphi %s699_s14, %s15_s14   ;;  %s662_s13 = sphi %s697_s13, %s927_s13   ;;  %s658_s12 = sphi %s695_s12, %s926_s12   ;;  %s654_s11 = sphi %s693_s11, %s925_s11   ;;  %s650_s10 = sphi %s691_s10, %s924_s10   ;;  %s646_s9 = sphi %s689_s9, %s923_s9  }
   0x5   : > { %s27_s17 = sadd.s32 1, %s662_s13  ;;  %s88_s18 = sadd.s32 1, %s654_s11 }
   0x6   : > { %p29_p0 = scmp.ge.s32.totalorder %s27_s17, 2  ;;  %p98_p1 = scmp.ne.s32.totalorder %s654_s11, %s650_s10 }
   0x7   : > { %p99_p2 = scmp.eq.s32.totalorder %s512_s15, 1  ;;  %p104_p3 = scmp.ne.s32.totalorder %s650_s10, %s646_s9 }
   0x8   : > { %s929_s17 = smov (%p29_p0, %s27_s17), 0  ;;  %p105_p5 = scmp.eq.s32.totalorder %s513_s16, 1 }
   0x9   : > { %p729_p4 = por %p99_p2, %p98_p1  ;;  %s83_s20 = ssub.s32 %s662_s13, %s929_s17 }
   0xa   : > { %p517_p6 = scmp.ge.s32.totalorder %s666_s14, 1  ;;  %p86_p7 = scmp.eq.s32.totalorder %s83_s20, 0 }
   0xb   : > { %p736_p8 = por %p105_p5, %p104_p3  ;;  %p148_p9 = scmp.lt.s32.totalorder %s666_s14, 3 }
   0xc   : > { %s742_s22 = scalar_select %p86_p7, %s654_s11, %s88_s18  }
   0xd   : > { %p149_p10 = pnand %p517_p6, %p148_p9 }
   0xe   : > { %s745_s23 = smul.u32 (!%p149_p10), 3, %s658_s12  ;;  %vm211_vm0 = vcmask (!%p149_p10), 261120   ;;  %s668_s29 = smov (!%p149_p10), 32   ;;  %vm227_vm1 = vcmask (!%p149_p10), 523520   ;;  %vm240_vm2 = vcmask (!%p149_p10), 785920   ;;  %v337_v7 = vlaneseq (!%p149_p10) }
   0xf   : > { %152 = sbr.rel (%p149_p10) target bundleno = 208 (0xd0), region = 28  ;;  %s669_s30 = smov (!%p149_p10), 64   ;;  %vm253_vm3 = vcmask (!%p149_p10), 1048320   ;;  %v335_v16 = vld [vmem:[%s919_s1] sm:$0x3f] (!%p149_p10) }
  0x10   : > { %p183_p11 = scmp.lt.s32.totalorder (!%p149_p10), %s745_s23, 4  ;;  %s175_s3 = sand.u32 (!%p149_p10), 1, %s650_s10   ;;  %v338_v10 = vshrl.u32 (!%p149_p10), %v337_v7, 7 }
  0x11   : > { %s670_s4 = smov (!%p149_p10), 96   ;;  %s526_s7 = smul.u32 (!%p149_p10), 144, %s175_s3 }
  0x12   : > { %v339_v13 = vsub.s32 (!%p149_p10), 0, %v338_v10  ;;  %v343_v14 = vsub.s32 (!%p149_p10), 1, %v338_v10  ;;  %v347_v15 = vsub.s32 (!%p149_p10), 2, %v338_v10  ;;  %v351_v17 = vsub.s32 (!%p149_p10), 3, %v338_v10  ;;  %s852_s15 = scalar_lea.sflag (!%p149_p10), [#allocation4], %s175_s3 }
  0x13   : > { %v355_v18 = vsub.s32 (!%p149_p10), 4, %v338_v10  ;;  %v359_v19 = vsub.s32 (!%p149_p10), 5, %v338_v10  ;;  %s830_s8 = scalar_lea.vmem (!%p149_p10), [#allocation3], %s526_s7 }
  0x14   : > { %v340_v21 = vrot.slane (!%p149_p10), %v335_v16, %v339_v13  ;;  %v344_v22 = vrot.slane (!%p149_p10), %v335_v16, %v343_v14  ;;  %v348_v23 = vrot.slane (!%p149_p10), %v335_v16, %v347_v15  ;;  %v352_v24 = vrot.slane (!%p149_p10), %v335_v16, %v351_v17 }
  0x15   : > { %v356_v25 = vrot.slane (!%p149_p10), %v335_v16, %v355_v18  ;;  %v360_v26 = vrot.slane (!%p149_p10), %v335_v16, %v359_v19 }
  0x16   : > { %s184_s24 = scalar_select %p183_p11, %s745_s23, 4 }
  0x17   : > { %s413_s16 = ssub.s32 (%p729_p4), 5, %s745_s23 }
  0x18   : > { %s518_s25 = sshll.u32 %s184_s24, 3  ;;  %p414_p12 = scmp.lt.s32.totalorder (%p729_p4), %s413_s16, 3 }
  0x19   : > { %s186_s28 = scalar_lea.vmem %s918_s0, %s518_s25 }
  0x1a   : > { %v208_v0 = vld [vmem:[%s186_s28] sm:$0xff]  ;;  %v210_v1 = vld [vmem:[%s186_s28 + $0x10] sm:$0xff]  ;;  %v209_v2 = vld [vmem:[%s186_s28 + $0x8] sm:$0xff] }
  0x1b   : > { %218 = vrot.lane.b32.xlu0 %v208_v0, %s668_s29  ;;  %222 = vrot.lane.b32.xlu1 %v210_v1, %s668_s29  ;;  %212 = vst.msk [vmem:[#allocation2] sm:$0xff] %vm211_vm0, %v208_v0  ;;  %257 = vst.msk [vmem:[#allocation2 + $0x8] sm:$0xff] %vm211_vm0, %v208_v0 }
  0x1c   : > { %269 = vst.msk [vmem:[#allocation2 + $0x10] sm:$0xff] %vm211_vm0, %v208_v0  ;;  %281 = vst.msk [vmem:[#allocation2 + $0x18] sm:$0xff] %vm211_vm0, %v208_v0 }
  0x1d   : > { %293 = vst.msk [vmem:[#allocation2 + $0x20] sm:$0xff] %vm211_vm0, %v208_v0  ;;  %305 = vst.msk [vmem:[#allocation2 + $0x28] sm:$0xff] %vm211_vm0, %v208_v0 }
  0x1e   : > { %213 = vst.msk [vmem:[#allocation2 + $0x30] sm:$0xff] %vm211_vm0, %v209_v2  ;;  %214 = vst.msk [vmem:[#allocation2 + $0x60] sm:$0xff] %vm211_vm0, %v210_v1 }
  0x1f   : > { %258 = vst.msk [vmem:[#allocation2 + $0x38] sm:$0xff] %vm211_vm0, %v209_v2  ;;  %259 = vst.msk [vmem:[#allocation2 + $0x68] sm:$0xff] %vm211_vm0, %v210_v1  ;;  %220 = vrot.lane.b32.xlu0 %v209_v2, %s668_s29  ;;  %231 = vrot.lane.b32.xlu1 %v208_v0, %s669_s30 }
  0x20   : > { %270 = vst.msk [vmem:[#allocation2 + $0x40] sm:$0xff] %vm211_vm0, %v209_v2  ;;  %271 = vst.msk [vmem:[#allocation2 + $0x70] sm:$0xff] %vm211_vm0, %v210_v1 }
  0x21   : > { %282 = vst.msk [vmem:[#allocation2 + $0x48] sm:$0xff] %vm211_vm0, %v209_v2  ;;  %283 = vst.msk [vmem:[#allocation2 + $0x78] sm:$0xff] %vm211_vm0, %v210_v1 }
  0x22   : > { %294 = vst.msk [vmem:[#allocation2 + $0x50] sm:$0xff] %vm211_vm0, %v209_v2  ;;  %295 = vst.msk [vmem:[#allocation2 + $0x80] sm:$0xff] %vm211_vm0, %v210_v1 }
  0x23   : > { %306 = vst.msk [vmem:[#allocation2 + $0x58] sm:$0xff] %vm211_vm0, %v209_v2  ;;  %307 = vst.msk [vmem:[#allocation2 + $0x88] sm:$0xff] %vm211_vm0, %v210_v1  ;;  %233 = vrot.lane.b32.xlu0 %v209_v2, %s669_s30  ;;  %235 = vrot.lane.b32.xlu1 %v210_v1, %s669_s30 }
  0x27   : > { %244 = vrot.lane.b32.xlu0 %v208_v0, %s670_s4  ;;  %246 = vrot.lane.b32.xlu1 %v209_v2, %s670_s4 }
  0x2b   : > { %248 = vrot.lane.b32.xlu0 %v210_v1, %s670_s4 }
  0x8d   : > { %v219_v3 = vpop.permute.xlu0 %218  ;;  %v223_v4 = vpop.permute.xlu1 %222 }
  0x8e   : > { %228 = vst.msk [vmem:[#allocation2] sm:$0xff] %vm227_vm1, %v219_v3  ;;  %260 = vst.msk [vmem:[#allocation2 + $0x8] sm:$0xff] %vm227_vm1, %v219_v3 }
  0x8f   : > { %272 = vst.msk [vmem:[#allocation2 + $0x10] sm:$0xff] %vm227_vm1, %v219_v3  ;;  %284 = vst.msk [vmem:[#allocation2 + $0x18] sm:$0xff] %vm227_vm1, %v219_v3 }
  0x90   : > { %296 = vst.msk [vmem:[#allocation2 + $0x20] sm:$0xff] %vm227_vm1, %v219_v3  ;;  %308 = vst.msk [vmem:[#allocation2 + $0x28] sm:$0xff] %vm227_vm1, %v219_v3 }
  0x91   : > { %230 = vst.msk [vmem:[#allocation2 + $0x60] sm:$0xff] %vm227_vm1, %v223_v4  ;;  %262 = vst.msk [vmem:[#allocation2 + $0x68] sm:$0xff] %vm227_vm1, %v223_v4  ;;  %v221_v5 = vpop.permute.xlu0 %220  ;;  %v232_v6 = vpop.permute.xlu1 %231 }
  0x92   : > { %274 = vst.msk [vmem:[#allocation2 + $0x70] sm:$0xff] %vm227_vm1, %v223_v4  ;;  %286 = vst.msk [vmem:[#allocation2 + $0x78] sm:$0xff] %vm227_vm1, %v223_v4 }
  0x93   : > { %298 = vst.msk [vmem:[#allocation2 + $0x80] sm:$0xff] %vm227_vm1, %v223_v4  ;;  %310 = vst.msk [vmem:[#allocation2 + $0x88] sm:$0xff] %vm227_vm1, %v223_v4 }
  0x94   : > { %229 = vst.msk [vmem:[#allocation2 + $0x30] sm:$0xff] %vm227_vm1, %v221_v5  ;;  %261 = vst.msk [vmem:[#allocation2 + $0x38] sm:$0xff] %vm227_vm1, %v221_v5 }
  0x95   : > { %273 = vst.msk [vmem:[#allocation2 + $0x40] sm:$0xff] %vm227_vm1, %v221_v5  ;;  %285 = vst.msk [vmem:[#allocation2 + $0x48] sm:$0xff] %vm227_vm1, %v221_v5  ;;  %v234_v8 = vpop.permute.xlu0 %233  ;;  %v236_v9 = vpop.permute.xlu1 %235 }
  0x96   : > { %297 = vst.msk [vmem:[#allocation2 + $0x50] sm:$0xff] %vm227_vm1, %v221_v5  ;;  %309 = vst.msk [vmem:[#allocation2 + $0x58] sm:$0xff] %vm227_vm1, %v221_v5 }
  0x97   : > { %241 = vst.msk [vmem:[#allocation2] sm:$0xff] %vm240_vm2, %v232_v6  ;;  %263 = vst.msk [vmem:[#allocation2 + $0x8] sm:$0xff] %vm240_vm2, %v232_v6 }
  0x98   : > { %275 = vst.msk [vmem:[#allocation2 + $0x10] sm:$0xff] %vm240_vm2, %v232_v6  ;;  %287 = vst.msk [vmem:[#allocation2 + $0x18] sm:$0xff] %vm240_vm2, %v232_v6 }
  0x99   : > { %299 = vst.msk [vmem:[#allocation2 + $0x20] sm:$0xff] %vm240_vm2, %v232_v6  ;;  %311 = vst.msk [vmem:[#allocation2 + $0x28] sm:$0xff] %vm240_vm2, %v232_v6  ;;  %v245_v11 = vpop.permute.xlu0 %244  ;;  %v247_v12 = vpop.permute.xlu1 %246 }
  0x9a   : > { %242 = vst.msk [vmem:[#allocation2 + $0x30] sm:$0xff] %vm240_vm2, %v234_v8  ;;  %264 = vst.msk [vmem:[#allocation2 + $0x38] sm:$0xff] %vm240_vm2, %v234_v8 }
  0x9b   : > { %276 = vst.msk [vmem:[#allocation2 + $0x40] sm:$0xff] %vm240_vm2, %v234_v8  ;;  %288 = vst.msk [vmem:[#allocation2 + $0x48] sm:$0xff] %vm240_vm2, %v234_v8 }
  0x9c   : > { %300 = vst.msk [vmem:[#allocation2 + $0x50] sm:$0xff] %vm240_vm2, %v234_v8  ;;  %312 = vst.msk [vmem:[#allocation2 + $0x58] sm:$0xff] %vm240_vm2, %v234_v8 }
  0x9d   : > { %243 = vst.msk [vmem:[#allocation2 + $0x60] sm:$0xff] %vm240_vm2, %v236_v9  ;;  %265 = vst.msk [vmem:[#allocation2 + $0x68] sm:$0xff] %vm240_vm2, %v236_v9  ;;  %v249_v20 = vpop.permute.xlu0 %248 }
  0x9e   : > { %277 = vst.msk [vmem:[#allocation2 + $0x70] sm:$0xff] %vm240_vm2, %v236_v9  ;;  %289 = vst.msk [vmem:[#allocation2 + $0x78] sm:$0xff] %vm240_vm2, %v236_v9 }
  0x9f   : > { %301 = vst.msk [vmem:[#allocation2 + $0x80] sm:$0xff] %vm240_vm2, %v236_v9  ;;  %313 = vst.msk [vmem:[#allocation2 + $0x88] sm:$0xff] %vm240_vm2, %v236_v9 }
  0xa0   : > { %254 = vst.msk [vmem:[#allocation2] sm:$0xff] %vm253_vm3, %v245_v11  ;;  %266 = vst.msk [vmem:[#allocation2 + $0x8] sm:$0xff] %vm253_vm3, %v245_v11 }
  0xa1   : > { %278 = vst.msk [vmem:[#allocation2 + $0x10] sm:$0xff] %vm253_vm3, %v245_v11  ;;  %290 = vst.msk [vmem:[#allocation2 + $0x18] sm:$0xff] %vm253_vm3, %v245_v11 }
  0xa2   : > { %302 = vst.msk [vmem:[#allocation2 + $0x20] sm:$0xff] %vm253_vm3, %v245_v11  ;;  %314 = vst.msk [vmem:[#allocation2 + $0x28] sm:$0xff] %vm253_vm3, %v245_v11 }
  0xa3   : > { %255 = vst.msk [vmem:[#allocation2 + $0x30] sm:$0xff] %vm253_vm3, %v247_v12  ;;  %267 = vst.msk [vmem:[#allocation2 + $0x38] sm:$0xff] %vm253_vm3, %v247_v12 }
  0xa4   : > { %279 = vst.msk [vmem:[#allocation2 + $0x40] sm:$0xff] %vm253_vm3, %v247_v12  ;;  %291 = vst.msk [vmem:[#allocation2 + $0x48] sm:$0xff] %vm253_vm3, %v247_v12 }
  0xa5   : > { %303 = vst.msk [vmem:[#allocation2 + $0x50] sm:$0xff] %vm253_vm3, %v247_v12  ;;  %315 = vst.msk [vmem:[#allocation2 + $0x58] sm:$0xff] %vm253_vm3, %v247_v12 }
  0xa6   : > { %256 = vst.msk [vmem:[#allocation2 + $0x60] sm:$0xff] %vm253_vm3, %v249_v20  ;;  %268 = vst.msk [vmem:[#allocation2 + $0x68] sm:$0xff] %vm253_vm3, %v249_v20 }
  0xa7   : > { %280 = vst.msk [vmem:[#allocation2 + $0x70] sm:$0xff] %vm253_vm3, %v249_v20  ;;  %292 = vst.msk [vmem:[#allocation2 + $0x78] sm:$0xff] %vm253_vm3, %v249_v20  ;;  %v317_v27 = vld [vmem:[#allocation2] sm:$0xff]  ;;  %v318_v28 = vld [vmem:[#allocation2 + $0x8] sm:$0xff] }
  0xa8   : > { %304 = vst.msk [vmem:[#allocation2 + $0x80] sm:$0xff] %vm253_vm3, %v249_v20  ;;  %316 = vst.msk [vmem:[#allocation2 + $0x88] sm:$0xff] %vm253_vm3, %v249_v20  ;;  %v319_v29 = vld [vmem:[#allocation2 + $0x10] sm:$0xff]  ;;  %v320_v30 = vld [vmem:[#allocation2 + $0x18] sm:$0xff]  ;;  %v367_v33 = vsub.f32 %v317_v27, %v340_v21  ;;  %v368_v34 = vsub.f32 %v318_v28, %v344_v22 }
  0xa9   : > { %v321_v31 = vld [vmem:[#allocation2 + $0x20] sm:$0xff]  ;;  %v322_v32 = vld [vmem:[#allocation2 + $0x28] sm:$0xff]  ;;  %v369_v35 = vsub.f32 %v319_v29, %v348_v23  ;;  %v370_v36 = vsub.f32 %v320_v30, %v352_v24 }
  0xaa   : > { %v371_v37 = vsub.f32 %v321_v31, %v356_v25  ;;  %v372_v38 = vsub.f32 %v322_v32, %v360_v26  ;;  %v323_v39 = vld [vmem:[#allocation2 + $0x30] sm:$0xff]  ;;  %v324_v40 = vld [vmem:[#allocation2 + $0x38] sm:$0xff]  ;;  %385 = vst [vmem:[%s830_s8] sm:$0xff] %v367_v33  ;;  %386 = vst [vmem:[%s830_s8 + $0x8] sm:$0xff] %v368_v34 }
  0xab   : > { %v325_v41 = vld [vmem:[#allocation2 + $0x40] sm:$0xff]  ;;  %387 = vst [vmem:[%s830_s8 + $0x10] sm:$0xff] %v369_v35  ;;  %v326_v42 = vld [vmem:[#allocation2 + $0x48] sm:$0xff]  ;;  %v373_v45 = vsub.f32 %v323_v39, %v340_v21  ;;  %v374_v46 = vsub.f32 %v324_v40, %v344_v22  ;;  %388 = vst [vmem:[%s830_s8 + $0x18] sm:$0xff] %v370_v36 }
  0xac   : > { %v327_v43 = vld [vmem:[#allocation2 + $0x50] sm:$0xff]  ;;  %v328_v44 = vld [vmem:[#allocation2 + $0x58] sm:$0xff]  ;;  %v375_v47 = vsub.f32 %v325_v41, %v348_v23  ;;  %389 = vst [vmem:[%s830_s8 + $0x20] sm:$0xff] %v371_v37  ;;  %390 = vst [vmem:[%s830_s8 + $0x28] sm:$0xff] %v372_v38  ;;  %v376_v48 = vsub.f32 %v326_v42, %v352_v24  ;;  %410 = sbr.rel (!%p729_p4) target bundleno = 208 (0xd0), region = 36 }
  0xad   : > { %v377_v49 = vsub.f32 %v327_v43, %v356_v25  ;;  %v378_v50 = vsub.f32 %v328_v44, %v360_v26  ;;  %v329_v51 = vld [vmem:[#allocation2 + $0x60] sm:$0xff]  ;;  %v330_v52 = vld [vmem:[#allocation2 + $0x68] sm:$0xff]  ;;  %391 = vst [vmem:[%s830_s8 + $0x30] sm:$0xff] %v373_v45  ;;  %392 = vst [vmem:[%s830_s8 + $0x38] sm:$0xff] %v374_v46 }
  0xae   : > { %v331_v53 = vld [vmem:[#allocation2 + $0x70] sm:$0xff]  ;;  %393 = vst [vmem:[%s830_s8 + $0x40] sm:$0xff] %v375_v47  ;;  %v332_v54 = vld [vmem:[#allocation2 + $0x78] sm:$0xff]  ;;  %v379_v57 = vsub.f32 %v329_v51, %v340_v21  ;;  %v380_v58 = vsub.f32 %v330_v52, %v344_v22  ;;  %394 = vst [vmem:[%s830_s8 + $0x48] sm:$0xff] %v376_v48 }
  0xaf   : > { %v333_v55 = vld [vmem:[#allocation2 + $0x80] sm:$0xff]  ;;  %v334_v56 = vld [vmem:[#allocation2 + $0x88] sm:$0xff]  ;;  %v381_v59 = vsub.f32 %v331_v53, %v348_v23  ;;  %395 = vst [vmem:[%s830_s8 + $0x50] sm:$0xff] %v377_v49  ;;  %396 = vst [vmem:[%s830_s8 + $0x58] sm:$0xff] %v378_v50  ;;  %v382_v60 = vsub.f32 %v332_v54, %v352_v24 }
  0xb0   : > { %v383_v61 = vsub.f32 %v333_v55, %v356_v25  ;;  %v384_v62 = vsub.f32 %v334_v56, %v360_v26  ;;  %397 = vst [vmem:[%s830_s8 + $0x60] sm:$0xff] %v379_v57  ;;  %398 = vst [vmem:[%s830_s8 + $0x68] sm:$0xff] %v380_v58 }
  0xb1   : > { %399 = vst [vmem:[%s830_s8 + $0x70] sm:$0xff] %v381_v59  ;;  %400 = vst [vmem:[%s830_s8 + $0x78] sm:$0xff] %v382_v60 }
  0xb2   : > { %401 = vst [vmem:[%s830_s8 + $0x80] sm:$0xff] %v383_v61  ;;  %402 = vst [vmem:[%s830_s8 + $0x88] sm:$0xff] %v384_v62 }
  0xb3   : > { %s931_s16 = smov (!%p414_p12, %s413_s16), 3 }
  0xb4   : > { %s857_s18 = smul.u32 768, %s931_s16 }
  0xb6   : > { %s419_s20 = ssub.s32 2304, %s857_s18 }
  0xb7   : > { %420 = vsyncadd %s852_s15, %s419_s20  ;;  %p521_p13 = scmp.ne.s32.totalorder %s857_s18, 0  ;;  %s533_s24 = smul.u32 2304, %s658_s12 }
  0xb8   : > { %s427_s25 = sshll.u32 %s830_s8, 4  ;;  %s671_s28 = smov [#allocation3]   ;;  %s869_s25 = int_to_ptr.vmem [resolvable:$true] %s427_s25 }
  0xb9   : > { %s867_s27 = scalar_lea.hbm %s920_s2, %s533_s24  ;;  %s588_s23 = scalar_lea.vmem %s869_s25, %s857_s18 }
  0xba   : > { %p589_p0 = scmp.ne.s32.totalorder %s869_s25, %s588_s23  ;;  %s592_s29 = sshll.u32 %s671_s28, 4  ;;  %s593_s29 = int_to_ptr.vmem [resolvable:$false] %s592_s29 }
  0xbb   : > { %s594_s12 = scalar_lea.vmem %s593_s29, 4608  ;;  %p595_p3 = scmp.lt.s32.totalorder %s869_s25, %s593_s29 }
  0xbc   : > { %p590_p1 = pnand %p589_p0, %p521_p13  ;;  %p596_p4 = scmp.lt.s32.totalorder %s594_s12, %s588_s23 }
  0xbe   : > { %p591_p2 = pneg %p590_p1  ;;  %p597_p5 = por %p596_p4, %p595_p3 }
  0xc0   : > { %p598_p6 = pnand %p597_p5, %p591_p2 }
  0xc2   : > { %601 = shalt.err (!%p598_p6)
}
  0xc3   : > { %s602_s30 = scalar_lea.hbm %s867_s27, %s857_s18  ;;  %s606_s5 = scalar_lea.hbm %s920_s2, 3840 }
  0xc4   : > { %p603_p7 = scmp.ne.s32.totalorder %s867_s27, %s602_s30  ;;  %p607_p11 = scmp.lt.u32.totalorder %s867_s27, %s920_s2 }
  0xc5   : > { %p608_p12 = scmp.lt.u32.totalorder %s606_s5, %s602_s30  ;;  %p610_p1 = scmp.lt.u32.totalorder %s602_s30, %s867_s27 }
  0xc6   : > { %p604_p9 = pnand %p603_p7, %p521_p13 }
  0xc7   : > { %p609_p0 = por %p608_p12, %p607_p11 }
  0xc8   : > { %p605_p10 = pneg %p604_p9 }
  0xc9   : > { %p611_p2 = por %p610_p1, %p609_p0 }
  0xcb   : > { %p612_p3 = pnand %p611_p2, %p605_p10 }
  0xcd   : > { %615 = shalt.err (!%p612_p3)
}
  0xce   : > { %s672_s8 = smov 768   ;;  %s673_s16 = smov 48  }
  0xcf   : > { %433 = dma.vmem_to_hbm [thread:$0]  (%p521_p13), %s869_s25, %s857_s18, %s867_s27, %s852_s15, %s672_s8, %s672_s8, %s673_s16  }
  0xd0 PF: > { %p534_p4 = scmp.ge.s32.totalorder %s666_s14, 2  ;;  %s442_s20 = sand.u32 1, %s646_s9  }
  0xd1   : > { %s443_s24 = scalar_lea.sflag [#allocation4], %s442_s20 }
  0xd2   : > { %p530_p5 = pnand %p534_p4, %p736_p8 }
  0xd4   : > { %641 = dma.done.wait (!%p530_p5), %s443_s24, 2304  }
  0xd5   : > { %643 = vsyncadd (!%p530_p5), %s443_s24, 4294964992  ;;  %s15_s14 = sadd.s32 1, %s666_s14   ;;  %s923_s9 = smov %s650_s10 }
  0xd6   : > { %p12_p6 = scmp.ge.s32.totalorder %s15_s14, 4   ;;  %s924_s10 = smov %s654_s11 }
  0xd7   : > { %s925_s11 = smov %s742_s22  ;;  %s926_s12 = smov %s662_s13 }
  0xd8   : > { %s927_s13 = smov %s929_s17  ;;  %14 = sbr.rel (!%p12_p6) target bundleno = 4 (0x4), region = 70 }
  0xdf   :  { %448 = vsyncpa [#allocation4], 1 }
  0xe0   :  { %450 = vsyncpa [#allocation4 + $0x1], 1 }

</bundles_post_ra>
